<compile_context>
chip_gen: v6e
topology: v6e:2x2x1
jax: 0.10.0
libtpu: 0.0.40
codegen_flags: <defaults>
</compile_context>

<pallas_src>
import functools

import jax
import jax.numpy as jnp
from jax.experimental import pallas as pl
from jax.experimental.pallas import tpu as pltpu


def _fused_ensemble_mlp_kernel(x_ref, *refs, n_layers: int):
    """Fused MLP over one (ensemble chunk, batch tile).

    x_ref : (Bb, Din)          if input was 2-D (shared across ensemble), or
            (Eb, Bb, Din)      if input was already per-ensemble.
    refs  : w0, b0, w1, b1, ..., w_{L-1}, b_{L-1}, o_ref
            w_l : (Eb, din_l, dout_l), b_l : (Eb, 1, dout_l)
    o_ref : (Eb, Bb, Dout_last)
    """
    o_ref = refs[-1]
    wb_refs = refs[:-1]
    eb = wb_refs[0].shape[0]

    x = x_ref[...]
    if x.ndim == 2:
        # Broadcast across the ensemble chunk in-kernel (no HBM duplication).
        h = jnp.broadcast_to(x[None, :, :], (eb,) + x.shape)
    else:
        h = x

    # Unrolled loop over layers; activations never leave VMEM.
    for li in range(n_layers):
        w = wb_refs[2 * li][...]        # (Eb, din, dout)
        b = wb_refs[2 * li + 1][...]    # (Eb, 1, dout)
        y = jnp.einsum(
            "ebi,eio->ebo", h, w, preferred_element_type=jnp.float32
        ) + b
        if li != n_layers - 1:
            y = jnp.maximum(y, 0.0)     # ReLU on hidden layers only
        h = y

    o_ref[...] = h.astype(o_ref.dtype)


def _choose_batch_block(batch, requested, max_block=512):
    """Pick a batch tile: full batch if small, else a multiple-of-8 divisor."""
    if requested is not None:
        assert batch % requested == 0, "batch_block must divide batch"
        return requested
    if batch <= max_block:
        return batch
    for bb in range(max_block, 7, -8):
        if batch % bb == 0:
            return bb
    return batch  # fallback: single tile


def ensemble_mlp_forward(x, params, num_ensemble, *, ensemble_block=None,
                         batch_block=None):
    """Forward pass of EnsembleMLP as one fused Pallas kernel.

    x: [B, input_dim] (broadcast across ensemble) or [E, B, input_dim].
    params: list of (W [E, din, dout], b [E, 1, dout]).
    Returns [E, B, output_dim].
    """
    E = num_ensemble
    n_layers = len(params)
    eb = E if ensemble_block is None else ensemble_block
    assert E % eb == 0, "ensemble_block must divide num_ensemble"

    if x.ndim == 2:
        B, Din = x.shape
    else:
        assert x.shape[0] == E, "3-D input must have leading ensemble dim"
        _, B, Din = x.shape

    bb = _choose_batch_block(B, batch_block)
    assert B % bb == 0

    # grid = (ensemble chunks, batch tiles); batch innermost so weights stay
    # resident in VMEM across consecutive batch tiles of the same chunk.
    grid = (E // eb, B // bb)

    if x.ndim == 2:
        x_spec = pl.BlockSpec((bb, Din), lambda g, t: (t, 0))
    else:
        x_spec = pl.BlockSpec((eb, bb, Din), lambda g, t: (g, t, 0))

    Dout = int(params[-1][0].shape[-1])

    in_specs = [x_spec]
    flat_inputs = [x]
    for (w, b) in params:
        din, dout = int(w.shape[1]), int(w.shape[2])
        in_specs.append(pl.BlockSpec((eb, din, dout), lambda g, t: (g, 0, 0)))
        in_specs.append(pl.BlockSpec((eb, 1, dout), lambda g, t: (g, 0, 0)))
        flat_inputs += [w, b]

    out_spec = pl.BlockSpec((eb, bb, Dout), lambda g, t: (g, t, 0))

    kernel = functools.partial(_fused_ensemble_mlp_kernel, n_layers=n_layers)

    return pl.pallas_call(
        kernel,
        out_shape=jax.ShapeDtypeStruct((E, B, Dout), x.dtype),
        grid_spec=pltpu.PrefetchScalarGridSpec(
            num_scalar_prefetch=0,
            grid=grid,
            in_specs=in_specs,
            out_specs=out_spec,
        ),
        compiler_params=pltpu.CompilerParams(
            # Both grid axes are independent -> megacore shardable on v7x.
            dimension_semantics=("parallel", "parallel"),
            # Explicit scoped-VMEM budget (safe on v5e/v6e/v7x at these sizes).
            vmem_limit_bytes=32 * 1024 * 1024,
        ),
    )(*flat_inputs)


def init_ensemble_mlp_params(key, input_dim, hidden_dims, output_dim, num_ensemble):
    """Deterministic init mirroring EnsembleLinear: trunc-normal weights, zero bias."""
    dims = [input_dim] + list(hidden_dims)
    layer_dims = list(zip(dims[:-1], dims[1:]))
    if output_dim is not None:
        layer_dims.append((dims[-1], output_dim))
    params = []
    for (din, dout) in layer_dims:
        key, wkey = jax.random.split(key)
        std = 1.0 / (2.0 * (din ** 0.5))
        w = std * jax.random.truncated_normal(
            wkey, -2.0, 2.0, (num_ensemble, din, dout), dtype=jnp.float32
        )
        b = jnp.zeros((num_ensemble, 1, dout), dtype=jnp.float32)
        params.append((w, b))
    return params


def ensemble_mlp_reference(x, params, num_ensemble):
    """Pure-JAX reference for correctness checking."""
    if x.ndim == 2:
        x = jnp.broadcast_to(x[None, :, :], (num_ensemble,) + x.shape)
    n_layers = len(params)
    for li, (w, b) in enumerate(params):
        x = jnp.einsum("ebi,eio->ebo", x, w) + b
        if li != n_layers - 1:
            x = jnp.maximum(x, 0.0)
    return x


if __name__ == "__main__":
    # Small shapes consistent with the module: ensemble=4, batch=8,
    # input_dim=16, hidden_dims=(32, 32), output_dim=8.
    num_ensemble = 4
    batch = 8
    input_dim = 16
    hidden_dims = (32, 32)
    output_dim = 8

    key = jax.random.PRNGKey(0)
    pkey, xkey = jax.random.split(key)

    params = init_ensemble_mlp_params(
        pkey, input_dim, hidden_dims, output_dim, num_ensemble
    )
    x = jax.random.normal(xkey, (batch, input_dim), dtype=jnp.float32)

    # 2-D input path (shared x, broadcast across the ensemble in-kernel).
    out = ensemble_mlp_forward(x, params, num_ensemble)
    out = jax.block_until_ready(out)
    ref = ensemble_mlp_reference(x, params, num_ensemble)
    assert out.shape == (num_ensemble, batch, output_dim), out.shape
    assert jnp.allclose(out, ref, atol=1e-5, rtol=1e-5), "2-D input: mismatch vs reference"

    # 3-D input path (per-ensemble inputs).
    x3 = jnp.broadcast_to(x[None, :, :], (num_ensemble, batch, input_dim))
    out3 = ensemble_mlp_forward(x3, params, num_ensemble)
    out3 = jax.block_until_ready(out3)
    assert jnp.allclose(out3, ref, atol=1e-5, rtol=1e-5), "3-D input: mismatch vs reference"

    # TODO(synk): for bf16 weights/activations on v6e/v7x, cast matmul inputs to
    # bf16 while keeping f32 accumulation; unnecessary for this f32 module.
    print("KERNEL_OK")
</pallas_src>

<mosaic_0001>
module attributes {stable_mosaic.version = 11 : i64} {
  func.func @_fused_ensemble_mlp_kernel(%arg0: i32, %arg1: i32, %arg2: memref<8x16xf32, #tpu.memory_space<vmem>>, %arg3: memref<4x16x32xf32, #tpu.memory_space<vmem>>, %arg4: memref<4x1x32xf32, #tpu.memory_space<vmem>>, %arg5: memref<4x32x32xf32, #tpu.memory_space<vmem>>, %arg6: memref<4x1x32xf32, #tpu.memory_space<vmem>>, %arg7: memref<4x32x8xf32, #tpu.memory_space<vmem>>, %arg8: memref<4x1x8xf32, #tpu.memory_space<vmem>>, %arg9: memref<4x8x8xf32, #tpu.memory_space<vmem>>) attributes {dimension_semantics = [#tpu.dimension_semantics<parallel>, #tpu.dimension_semantics<parallel>], iteration_bounds = array<i64: 1, 1>, scalar_prefetch = 0 : i64, scratch_operands = 0 : i64, tpu.core_type = #tpu.core_type<tc>, window_params = [{transform_indices = @transform_0, window_bounds = array<i64: 8, 16>}, {transform_indices = @transform_1, window_bounds = array<i64: 4, 16, 32>}, {transform_indices = @transform_2, window_bounds = array<i64: 4, 1, 32>}, {transform_indices = @transform_3, window_bounds = array<i64: 4, 32, 32>}, {transform_indices = @transform_4, window_bounds = array<i64: 4, 1, 32>}, {transform_indices = @transform_5, window_bounds = array<i64: 4, 32, 8>}, {transform_indices = @transform_6, window_bounds = array<i64: 4, 1, 8>}, {transform_indices = @transform_7, window_bounds = array<i64: 4, 8, 8>}]} {
    %c0 = arith.constant 0 : index
    %c0_0 = arith.constant 0 : index
    %0 = vector.load %arg2[%c0, %c0_0] : memref<8x16xf32, #tpu.memory_space<vmem>>, vector<8x16xf32>
    %1 = vector.shape_cast %0 : vector<8x16xf32> to vector<1x8x16xf32>
    %2 = vector.shape_cast %1 : vector<1x8x16xf32> to vector<1x8x16xf32>
    %3 = vector.broadcast %2 : vector<1x8x16xf32> to vector<4x8x16xf32>
    %c0_1 = arith.constant 0 : index
    %c0_2 = arith.constant 0 : index
    %c0_3 = arith.constant 0 : index
    %4 = vector.load %arg3[%c0_1, %c0_2, %c0_3] : memref<4x16x32xf32, #tpu.memory_space<vmem>>, vector<4x16x32xf32>
    %c0_4 = arith.constant 0 : index
    %c0_5 = arith.constant 0 : index
    %c0_6 = arith.constant 0 : index
    %5 = vector.load %arg4[%c0_4, %c0_5, %c0_6] : memref<4x1x32xf32, #tpu.memory_space<vmem>>, vector<4x1x32xf32>
    "tpu.trace_start"() <{level = 10 : i32, message = "ebi,eio->ebo"}> : () -> ()
    %cst = arith.constant dense<0.000000e+00> : vector<4x8x32xf32>
    %6 = tpu.matmul %3, %4, %cst {dimension_numbers = #tpu.dot_dimension_numbers<[2], [1], [1], [2], [0, 0, 0, 1, 1, 2], [0], [0]>} : vector<4x8x16xf32>, vector<4x16x32xf32>, vector<4x8x32xf32> -> vector<4x8x32xf32>
    "tpu.trace_stop"() : () -> ()
    %7 = vector.broadcast %5 : vector<4x1x32xf32> to vector<4x8x32xf32>
    %8 = arith.addf %6, %7 : vector<4x8x32xf32>
    %cst_7 = arith.constant 0.000000e+00 : f32
    %9 = vector.broadcast %cst_7 : f32 to vector<4x8x32xf32>
    %10 = arith.maximumf %8, %9 : vector<4x8x32xf32>
    %c0_8 = arith.constant 0 : index
    %c0_9 = arith.constant 0 : index
    %c0_10 = arith.constant 0 : index
    %11 = vector.load %arg5[%c0_8, %c0_9, %c0_10] : memref<4x32x32xf32, #tpu.memory_space<vmem>>, vector<4x32x32xf32>
    %c0_11 = arith.constant 0 : index
    %c0_12 = arith.constant 0 : index
    %c0_13 = arith.constant 0 : index
    %12 = vector.load %arg6[%c0_11, %c0_12, %c0_13] : memref<4x1x32xf32, #tpu.memory_space<vmem>>, vector<4x1x32xf32>
    "tpu.trace_start"() <{level = 10 : i32, message = "ebi,eio->ebo"}> : () -> ()
    %cst_14 = arith.constant dense<0.000000e+00> : vector<4x8x32xf32>
    %13 = tpu.matmul %10, %11, %cst_14 {dimension_numbers = #tpu.dot_dimension_numbers<[2], [1], [1], [2], [0, 0, 0, 1, 1, 2], [0], [0]>} : vector<4x8x32xf32>, vector<4x32x32xf32>, vector<4x8x32xf32> -> vector<4x8x32xf32>
    "tpu.trace_stop"() : () -> ()
    %14 = vector.broadcast %12 : vector<4x1x32xf32> to vector<4x8x32xf32>
    %15 = arith.addf %13, %14 : vector<4x8x32xf32>
    %cst_15 = arith.constant 0.000000e+00 : f32
    %16 = vector.broadcast %cst_15 : f32 to vector<4x8x32xf32>
    %17 = arith.maximumf %15, %16 : vector<4x8x32xf32>
    %c0_16 = arith.constant 0 : index
    %c0_17 = arith.constant 0 : index
    %c0_18 = arith.constant 0 : index
    %18 = vector.load %arg7[%c0_16, %c0_17, %c0_18] : memref<4x32x8xf32, #tpu.memory_space<vmem>>, vector<4x32x8xf32>
    %c0_19 = arith.constant 0 : index
    %c0_20 = arith.constant 0 : index
    %c0_21 = arith.constant 0 : index
    %19 = vector.load %arg8[%c0_19, %c0_20, %c0_21] : memref<4x1x8xf32, #tpu.memory_space<vmem>>, vector<4x1x8xf32>
    "tpu.trace_start"() <{level = 10 : i32, message = "ebi,eio->ebo"}> : () -> ()
    %cst_22 = arith.constant dense<0.000000e+00> : vector<4x8x8xf32>
    %20 = tpu.matmul %17, %18, %cst_22 {dimension_numbers = #tpu.dot_dimension_numbers<[2], [1], [1], [2], [0, 0, 0, 1, 1, 2], [0], [0]>} : vector<4x8x32xf32>, vector<4x32x8xf32>, vector<4x8x8xf32> -> vector<4x8x8xf32>
    "tpu.trace_stop"() : () -> ()
    %21 = vector.broadcast %19 : vector<4x1x8xf32> to vector<4x8x8xf32>
    %22 = arith.addf %20, %21 : vector<4x8x8xf32>
    %c0_23 = arith.constant 0 : index
    %c0_24 = arith.constant 0 : index
    %c0_25 = arith.constant 0 : index
    %23 = vector.load %arg9[%c0_23, %c0_24, %c0_25] : memref<4x8x8xf32, #tpu.memory_space<vmem>>, vector<4x8x8xf32>
    tpu.vector_store %arg9[%c0_23, %c0_24, %c0_25], %22 {strides = array<i32>} : memref<4x8x8xf32, #tpu.memory_space<vmem>>, vector<4x8x8xf32>,
    return
  }
  func.func @transform_0(%arg0: i32, %arg1: i32) -> (i32, i32) {
    %c0_i32 = arith.constant 0 : i32
    %c0_i32_0 = arith.constant 0 : i32
    return %arg1, %c0_i32 : i32, i32
  }
  func.func @transform_1(%arg0: i32, %arg1: i32) -> (i32, i32, i32) {
    %c0_i32 = arith.constant 0 : i32
    %c0_i32_0 = arith.constant 0 : i32
    %c0_i32_1 = arith.constant 0 : i32
    return %arg0, %c0_i32, %c0_i32_0 : i32, i32, i32
  }
  func.func @transform_2(%arg0: i32, %arg1: i32) -> (i32, i32, i32) {
    %c0_i32 = arith.constant 0 : i32
    %c0_i32_0 = arith.constant 0 : i32
    %c0_i32_1 = arith.constant 0 : i32
    return %arg0, %c0_i32, %c0_i32_0 : i32, i32, i32
  }
  func.func @transform_3(%arg0: i32, %arg1: i32) -> (i32, i32, i32) {
    %c0_i32 = arith.constant 0 : i32
    %c0_i32_0 = arith.constant 0 : i32
    %c0_i32_1 = arith.constant 0 : i32
    return %arg0, %c0_i32, %c0_i32_0 : i32, i32, i32
  }
  func.func @transform_4(%arg0: i32, %arg1: i32) -> (i32, i32, i32) {
    %c0_i32 = arith.constant 0 : i32
    %c0_i32_0 = arith.constant 0 : i32
    %c0_i32_1 = arith.constant 0 : i32
    return %arg0, %c0_i32, %c0_i32_0 : i32, i32, i32
  }
  func.func @transform_5(%arg0: i32, %arg1: i32) -> (i32, i32, i32) {
    %c0_i32 = arith.constant 0 : i32
    %c0_i32_0 = arith.constant 0 : i32
    %c0_i32_1 = arith.constant 0 : i32
    return %arg0, %c0_i32, %c0_i32_0 : i32, i32, i32
  }
  func.func @transform_6(%arg0: i32, %arg1: i32) -> (i32, i32, i32) {
    %c0_i32 = arith.constant 0 : i32
    %c0_i32_0 = arith.constant 0 : i32
    %c0_i32_1 = arith.constant 0 : i32
    return %arg0, %c0_i32, %c0_i32_0 : i32, i32, i32
  }
  func.func @transform_7(%arg0: i32, %arg1: i32) -> (i32, i32, i32) {
    %c0_i32 = arith.constant 0 : i32
    %c0_i32_0 = arith.constant 0 : i32
    return %arg0, %arg1, %c0_i32 : i32, i32, i32
  }
}

</mosaic_0001>

<bundles_post_ra>
// kernel: tpu_custom_call.1
= control target key start
LH: loop header
LB: loop body
LE: loop exit
PB: predicated region body
PF: predicated region fallthrough
CT: control target
= control target key end

     0   :  { %12 = vsyncpa [#allocation3], 0  ;;  %s1580_s0 = inlined_call_operand.vmem [shape: f32[8,16], index: 0, kind: input, shape index: {}]   ;;  %s1581_s1 = inlined_call_operand.hbm [shape: f32[4,16,32], index: 1, kind: input, shape index: {}]   ;;  %s1582_s2 = inlined_call_operand.vmem [shape: f32[4,1,32], index: 2, kind: input, shape index: {}]   ;;  %s1583_s3 = inlined_call_operand.vmem [shape: f32[4,32,32], index: 3, kind: input, shape index: {}]   ;;  %s1584_s4 = inlined_call_operand.vmem [shape: f32[4,1,32], index: 4, kind: input, shape index: {}]   ;;  %s1585_s5 = inlined_call_operand.vmem [shape: f32[4,32,8], index: 5, kind: input, shape index: {}]   ;;  %s1586_s6 = inlined_call_operand.vmem [shape: f32[4,1,8], index: 6, kind: input, shape index: {}]   ;;  %s1587_s7 = inlined_call_operand.hbm [shape: f32[4,8,8], index: 7, kind: output, shape index: {}]  }
   0x1   :  { %13 = vsyncpa [#allocation4], 0  ;;  %s1307_s24 = smov [#allocation2]  }
   0x2   :  { %s21_s25 = sshll.u32 %s1307_s24, 4  ;;  %s22_s25 = int_to_ptr.vmem [resolvable:$true] %s21_s25 }
   0x3   :  { %s1271_s26 = scalar_lea.vmem %s22_s25, 1024  ;;  %p1276_p1 = scmp.lt.s32.totalorder %s22_s25, %s22_s25 }
   0x4   :  { %p1272_p0 = scmp.ne.s32.totalorder %s22_s25, %s1271_s26  ;;  %p1277_p2 = scmp.lt.s32.totalorder %s1271_s26, %s1271_s26 }
   0x6   :  { %p1278_p3 = por %p1277_p2, %p1276_p1 }
   0x8   :  { %p1279_p4 = pnand %p1278_p3, %p1272_p0 }
   0xa   :  { %1282 = shalt.err (!%p1279_p4)
}
   0xb   :  { %s1308_s27 = smov 128   ;;  %s1309_s28 = smov 8  }
   0xc   :  { %27 = dma.hbm_to_vmem [thread:$0]  %s1581_s1, 1024, %s22_s25, [#allocation3], %s1308_s27, %s1308_s27, %s1309_s28  }
   0xd   :  { %1303 = dma.done.wait [#allocation3], 1024  }
   0xe   :  { %1304 = vsyncadd [#allocation3], 4294966272  ;;  %v1310_v0 = vmov 0.0   ;;  %vm1311_vm0 = vmmov 0   ;;  %v43_v1 = vld [vmem:[#allocation2 + $0x8] sm:$0xff]  ;;  %v45_v2 = vld [vmem:[#allocation2 + $0x18] sm:$0xff] }
   0xf   :  { %1141 = vmatprep.subr.mxu0 %v1310_v0  ;;  %1148 = vmatprep.subr.mxu1 %v1310_v0  ;;  %v42_v3 = vld [vmem:[#allocation2] sm:$0xff]  ;;  %v44_v4 = vld [vmem:[#allocation2 + $0x10] sm:$0xff]  ;;  %vm78_vm1 = vcmask 130048   ;;  %v47_v6 = vld [vmem:[#allocation2 + $0x28] sm:$0xff]  ;;  %vm410_vm2 = vcmask 261120   ;;  %vm1043_vm3 = vcmask 64512  }
  0x10   :  { %1145 = vmatprep.mubr.msk.f32.mxu0 %vm1311_vm0, %v1310_v0  ;;  %1152 = vmatprep.mubr.msk.f32.mxu1 %vm1311_vm0, %v1310_v0  ;;  %v41_v5 = vld [vmem:[%s1580_s0] sm:$0xff]  ;;  %v49_v7 = vld [vmem:[#allocation2 + $0x38] sm:$0xff]  ;;  %v48_v9 = vld [vmem:[#allocation2 + $0x30] sm:$0xff]  ;;  %s1312_s20 = smov [#allocation5]  }
  0x11   :  { %1142 = vmatpush3.msra.mxu0 %v43_v1  ;;  %1149 = vmatpush3.msra.mxu1 %v45_v2  ;;  %v46_v8 = vld [vmem:[#allocation2 + $0x20] sm:$0xff]  ;;  %v369_v10 = vld [vmem:[%s1583_s3 + $0x18] sm:$0xff]  ;;  %v368_v12 = vld [vmem:[%s1583_s3 + $0x10] sm:$0xff]  ;;  %s1053_s21 = sshll.u32 %s1312_s20, 4  ;;  %s1054_s21 = int_to_ptr.vmem [resolvable:$true] %s1053_s21 }
  0x12   :  { %1143 = vmatprep.subr.mxu0 %v1310_v0  ;;  %1150 = vmatprep.subr.mxu1 %v1310_v0  ;;  %v373_v11 = vld [vmem:[%s1583_s3 + $0x38] sm:$0xff]  ;;  %v372_v13 = vld [vmem:[%s1583_s3 + $0x30] sm:$0xff]  ;;  %v367_v14 = vld [vmem:[%s1583_s3 + $0x8] sm:$0xff]  ;;  %s1283_s22 = scalar_lea.vmem %s1054_s21, 512  ;;  %p1288_p6 = scmp.lt.s32.totalorder %s1054_s21, %s1054_s21 }
  0x13   :  { %1144 = vmatpush3.msra.mxu0 %v42_v3  ;;  %1151 = vmatpush3.msra.mxu1 %v44_v4  ;;  %v371_v15 = vld [vmem:[%s1583_s3 + $0x28] sm:$0xff]  ;;  %v366_v16 = vld [vmem:[%s1583_s3] sm:$0xff]  ;;  %v377_v28 = vld [vmem:[%s1583_s3 + $0x58] sm:$0xff]  ;;  %p1284_p5 = scmp.ne.s32.totalorder %s1054_s21, %s1283_s22  ;;  %p1289_p7 = scmp.lt.s32.totalorder %s1283_s22, %s1283_s22 }
  0x14   :  { %1146 = vmatmul.mubr.msk.f32.vlgmr.msra.gmra.mxu0 %vm78_vm1, %v41_v5  ;;  %1153 = vmatmul.mubr.msk.f32.vlgmr.msra.gmra.mxu1 %vm78_vm1, %v41_v5  ;;  %v370_v17 = vld [vmem:[%s1583_s3 + $0x20] sm:$0xff]  ;;  %v381_v29 = vld [vmem:[%s1583_s3 + $0x78] sm:$0xff]  ;;  %v376_v32 = vld [vmem:[%s1583_s3 + $0x50] sm:$0xff] }
  0x15   :  { %1155 = vmatprep.subr.mxu0 %v1310_v0  ;;  %1162 = vmatprep.subr.mxu1 %v1310_v0  ;;  %v1065_v18 = vld [vmem:[%s1582_s2] ss:$0 sm:$0xff]  ;;  %v1066_v19 = vld [vmem:[%s1582_s2 + $0x1] ss:$0 sm:$0xff]  ;;  %v1067_v30 = vld [vmem:[%s1582_s2 + $0x2] ss:$0 sm:$0xff]  ;;  %p1290_p8 = por %p1289_p7, %p1288_p6 }
  0x16   :  { %1156 = vmatpush3.msra.mxu0 %v47_v6  ;;  %1163 = vmatpush3.msra.mxu1 %v49_v7  ;;  %v1068_v31 = vld [vmem:[%s1582_s2 + $0x3] ss:$0 sm:$0xff]  ;;  %v380_v33 = vld [vmem:[%s1583_s3 + $0x70] sm:$0xff]  ;;  %v375_v38 = vld [vmem:[%s1583_s3 + $0x48] sm:$0xff] }
  0x17   :  { %1157 = vmatprep.subr.mxu0 %v1310_v0  ;;  %1164 = vmatprep.subr.mxu1 %v1310_v0  ;;  %v379_v39 = vld [vmem:[%s1583_s3 + $0x68] sm:$0xff]  ;;  %v374_v42 = vld [vmem:[%s1583_s3 + $0x40] sm:$0xff]  ;;  %v710_v46 = vld [vmem:[%s1585_s5 + $0x18] sm:$0xff]  ;;  %p1291_p9 = pnand %p1290_p8, %p1284_p5 }
  0x18   :  { %1158 = vmatpush3.msra.mxu0 %v46_v8  ;;  %1159 = vmatprep.mubr.msk.f32.mxu0 %vm1311_vm0, %v1310_v0  ;;  %v378_v45 = vld [vmem:[%s1583_s3 + $0x60] sm:$0xff]  ;;  %v714_v47 = vld [vmem:[%s1585_s5 + $0x38] sm:$0xff]  ;;  %v709_v48 = vld [vmem:[%s1585_s5 + $0x10] sm:$0xff] }
  0x19   :  { %1165 = vmatpush3.msra.mxu1 %v48_v9  ;;  %1166 = vmatprep.mubr.msk.f32.mxu1 %vm1311_vm0, %v1310_v0  ;;  %v713_v49 = vld [vmem:[%s1585_s5 + $0x30] sm:$0xff]  ;;  %v708_v50 = vld [vmem:[%s1585_s5 + $0x8] sm:$0xff]  ;;  %v707_v52 = vld [vmem:[%s1585_s5] sm:$0xff] }
  0x1a   :  { %1160 = vmatmul.mubr.msk.f32.vlgmr.msra.gmra.mxu0 %vm78_vm1, %v41_v5  ;;  %1167 = vmatmul.mubr.msk.f32.vlgmr.msra.gmra.mxu1 %vm78_vm1, %v41_v5  ;;  %v712_v51 = vld [vmem:[%s1585_s5 + $0x28] sm:$0xff]  ;;  %v711_v53 = vld [vmem:[%s1585_s5 + $0x20] sm:$0xff]  ;;  %v718_v1 = vld [vmem:[%s1585_s5 + $0x58] sm:$0xff] }
  0x1b   :  { %1169 = vmatprep.subr.mxu0 %v1310_v0  ;;  %1180 = vmatprep.subr.mxu1 %v1310_v0  ;;  %v1073_v54 = vld [vmem:[%s1584_s4] ss:$0 sm:$0xff]  ;;  %v1074_v55 = vld [vmem:[%s1584_s4 + $0x1] ss:$0 sm:$0xff]  ;;  %v722_v2 = vld [vmem:[%s1585_s5 + $0x78] sm:$0xff] }
  0x1c   :  { %1170 = vmatpush3.msra.mxu0 %v369_v10  ;;  %1181 = vmatpush3.msra.mxu1 %v373_v11  ;;  %v717_v3 = vld [vmem:[%s1585_s5 + $0x50] sm:$0xff]  ;;  %v1075_v5 = vld [vmem:[%s1584_s4 + $0x2] ss:$0 sm:$0xff]  ;;  %v1076_v6 = vld [vmem:[%s1584_s4 + $0x3] ss:$0 sm:$0xff] }
  0x1d   :  { %1171 = vmatprep.subr.mxu0 %v1310_v0  ;;  %1182 = vmatprep.subr.mxu1 %v1310_v0  ;;  %v721_v4 = vld [vmem:[%s1585_s5 + $0x70] sm:$0xff]  ;;  %v716_v7 = vld [vmem:[%s1585_s5 + $0x48] sm:$0xff]  ;;  %v715_v11 = vld [vmem:[%s1585_s5 + $0x40] sm:$0xff] }
  0x1e   :  { %1172 = vmatpush3.msra.mxu0 %v368_v12  ;;  %1183 = vmatpush3.msra.mxu1 %v372_v13  ;;  %v720_v8 = vld [vmem:[%s1585_s5 + $0x68] sm:$0xff] }
  0x1f   :  { %1173 = vmatprep.subr.mxu0 %v1310_v0  ;;  %1184 = vmatprep.subr.mxu1 %v1310_v0 }
  0x20   :  { %1177 = vmatprep.mubr.msk.f32.mxu0 %vm1311_vm0, %v1310_v0  ;;  %1188 = vmatprep.mubr.msk.f32.mxu1 %vm1311_vm0, %v1310_v0 }
  0x21   :  { %1174 = vmatpush3.msra.mxu0 %v367_v14  ;;  %1185 = vmatpush3.msra.mxu1 %v371_v15  ;;  %v719_v14 = vld [vmem:[%s1585_s5 + $0x60] sm:$0xff] }
  0x22   :  { %1175 = vmatprep.subr.mxu0 %v1310_v0  ;;  %1186 = vmatprep.subr.mxu1 %v1310_v0 }
  0x23   :  { %1176 = vmatpush3.msra.mxu0 %v366_v16  ;;  %1187 = vmatpush3.msra.mxu1 %v370_v17 }
  0x24   :  { %1191 = vmatprep.subr.mxu0 %v1310_v0  ;;  %1202 = vmatprep.subr.mxu1 %v1310_v0 }
  0xd4   :  { %v148_v20 = vpop.f32.mrf.mxu0  ;;  %v218_v21 = vpop.f32.mrf.mxu1 }
  0xd5   :  { %v149_v22 = vadd.f32 %v1065_v18, %v148_v20  ;;  %v219_v23 = vadd.f32 %v1066_v19, %v218_v21  ;;  %v1081_v19 = vld [vmem:[%s1586_s6] ss:$0 sm:$0xff]  ;;  %v1082_v20 = vld [vmem:[%s1586_s6 + $0x1] ss:$0 sm:$0xff] }
  0xd6   :  { %v1147_v24 = vpop.f32.mrf.mxu0  ;;  %v1154_v25 = vpop.f32.mrf.mxu1 }
  0xd7   :  { %v362_v26 = vmax.f32 %v149_v22, 0.0  ;;  %v363_v27 = vmax.f32 %v219_v23, 0.0 }
  0xd9   :  { %1178 = vmatmul.mubr.msk.f32.vlgmr.msra.gmra.mxu0 %vm410_vm2, %v362_v26  ;;  %1189 = vmatmul.mubr.msk.f32.vlgmr.msra.gmra.mxu1 %vm410_vm2, %v363_v27  ;;  %v1084_v27 = vld [vmem:[%s1586_s6 + $0x3] ss:$0 sm:$0xff] }
  0xda   :  { %v288_v34 = vpop.f32.mrf.mxu0  ;;  %v358_v35 = vpop.f32.mrf.mxu1  ;;  %1192 = vmatpush3.msra.mxu0 %v377_v28  ;;  %1203 = vmatpush3.msra.mxu1 %v381_v29 }
  0xdb   :  { %v289_v36 = vadd.f32 %v1067_v30, %v288_v34  ;;  %v359_v37 = vadd.f32 %v1068_v31, %v358_v35  ;;  %1193 = vmatprep.subr.mxu0 %v1310_v0  ;;  %1204 = vmatprep.subr.mxu1 %v1310_v0 }
  0xdc   :  { %v1161_v40 = vpop.f32.mrf.mxu0  ;;  %v1168_v41 = vpop.f32.mrf.mxu1  ;;  %1194 = vmatpush3.msra.mxu0 %v376_v32  ;;  %1205 = vmatpush3.msra.mxu1 %v380_v33 }
  0xdd   :  { %1195 = vmatprep.subr.mxu0 %v1310_v0  ;;  %1206 = vmatprep.subr.mxu1 %v1310_v0  ;;  %v364_v43 = vmax.f32 %v289_v36, 0.0  ;;  %v365_v44 = vmax.f32 %v359_v37, 0.0 }
  0xde   :  { %1196 = vmatpush3.msra.mxu0 %v375_v38  ;;  %1207 = vmatpush3.msra.mxu1 %v379_v39 }
  0xdf   :  { %1197 = vmatprep.subr.mxu0 %v1310_v0  ;;  %1208 = vmatprep.subr.mxu1 %v1310_v0 }
  0xe0   :  { %1198 = vmatpush3.msra.mxu0 %v374_v42  ;;  %1199 = vmatprep.mubr.msk.f32.mxu0 %vm1311_vm0, %v1310_v0 }
  0xe1   :  { %1209 = vmatpush3.msra.mxu1 %v378_v45  ;;  %1210 = vmatprep.mubr.msk.f32.mxu1 %vm1311_vm0, %v1310_v0 }
  0xe2   :  { %1200 = vmatmul.mubr.msk.f32.vlgmr.msra.gmra.mxu0 %vm410_vm2, %v364_v43  ;;  %1211 = vmatmul.mubr.msk.f32.vlgmr.msra.gmra.mxu1 %vm410_vm2, %v365_v44 }
  0xe3   :  { %1213 = vmatprep.subr.mxu0 %v1310_v0  ;;  %1224 = vmatprep.subr.mxu1 %v1310_v0 }
  0xe4   :  { %1214 = vmatpush3.msra.mxu0 %v710_v46  ;;  %1225 = vmatpush3.msra.mxu1 %v714_v47 }
  0xe5   :  { %1215 = vmatprep.subr.mxu0 %v1310_v0  ;;  %1226 = vmatprep.subr.mxu1 %v1310_v0 }
  0xe6   :  { %1216 = vmatpush3.msra.mxu0 %v709_v48  ;;  %1227 = vmatpush3.msra.mxu1 %v713_v49 }
  0xe7   :  { %1217 = vmatprep.subr.mxu0 %v1310_v0  ;;  %1228 = vmatprep.subr.mxu1 %v1310_v0 }
  0xe8   :  { %1221 = vmatprep.mubr.msk.f32.mxu0 %vm1311_vm0, %v1310_v0  ;;  %1232 = vmatprep.mubr.msk.f32.mxu1 %vm1311_vm0, %v1310_v0 }
  0xe9   :  { %1218 = vmatpush3.msra.mxu0 %v708_v50  ;;  %1229 = vmatpush3.msra.mxu1 %v712_v51 }
  0xea   :  { %1219 = vmatprep.subr.mxu0 %v1310_v0  ;;  %1230 = vmatprep.subr.mxu1 %v1310_v0 }
  0xeb   :  { %1220 = vmatpush3.msra.mxu0 %v707_v52  ;;  %1231 = vmatpush3.msra.mxu1 %v711_v53 }
  0xec   :  { %1235 = vmatprep.subr.mxu0 %v1310_v0  ;;  %1246 = vmatprep.subr.mxu1 %v1310_v0 }
 0x199   :  { %v480_v56 = vpop.f32.mrf.mxu0  ;;  %v553_v57 = vpop.f32.mrf.mxu1 }
 0x19a   :  { %v481_v58 = vadd.f32 %v1073_v54, %v480_v56  ;;  %v554_v59 = vadd.f32 %v1074_v55, %v553_v57 }
 0x19b   :  { %v1179_v60 = vpop.f32.mrf.mxu0  ;;  %v1190_v61 = vpop.f32.mrf.mxu1 }
 0x19c   :  { %v703_v62 = vmax.f32 %v481_v58, 0.0  ;;  %v704_v63 = vmax.f32 %v554_v59, 0.0 }
 0x19e   :  { %1222 = vmatmul.mubr.msk.f32.vlgmr.msra.gmra.mxu0 %vm410_vm2, %v703_v62  ;;  %1233 = vmatmul.mubr.msk.f32.vlgmr.msra.gmra.mxu1 %vm410_vm2, %v704_v63 }
 0x19f   :  { %1236 = vmatpush3.msra.mxu0 %v718_v1  ;;  %1247 = vmatpush3.msra.mxu1 %v722_v2 }
 0x1a0   :  { %1237 = vmatprep.subr.mxu0 %v1310_v0  ;;  %1248 = vmatprep.subr.mxu1 %v1310_v0 }
 0x1a1   :  { %1238 = vmatpush3.msra.mxu0 %v717_v3  ;;  %1249 = vmatpush3.msra.mxu1 %v721_v4 }
 0x1a2   :  { %v626_v9 = vpop.f32.mrf.mxu0  ;;  %v699_v10 = vpop.f32.mrf.mxu1  ;;  %1239 = vmatprep.subr.mxu0 %v1310_v0  ;;  %1250 = vmatprep.subr.mxu1 %v1310_v0 }
 0x1a3   :  { %v627_v12 = vadd.f32 %v1075_v5, %v626_v9  ;;  %v700_v13 = vadd.f32 %v1076_v6, %v699_v10  ;;  %1240 = vmatpush3.msra.mxu0 %v716_v7  ;;  %1251 = vmatpush3.msra.mxu1 %v720_v8 }
 0x1a4   :  { %v1201_v15 = vpop.f32.mrf.mxu0  ;;  %v1212_v16 = vpop.f32.mrf.mxu1  ;;  %1241 = vmatprep.subr.mxu0 %v1310_v0  ;;  %1252 = vmatprep.subr.mxu1 %v1310_v0 }
 0x1a5   :  { %v705_v17 = vmax.f32 %v627_v12, 0.0  ;;  %v706_v18 = vmax.f32 %v700_v13, 0.0  ;;  %1242 = vmatpush3.msra.mxu0 %v715_v11  ;;  %1243 = vmatprep.mubr.msk.f32.mxu0 %vm1311_vm0, %v1310_v0 }
 0x1a6   :  { %1253 = vmatpush3.msra.mxu1 %v719_v14  ;;  %1254 = vmatprep.mubr.msk.f32.mxu1 %vm1311_vm0, %v1310_v0  ;;  %v1083_v0 = vld [vmem:[%s1586_s6 + $0x2] ss:$0 sm:$0xff] }
 0x1a7   :  { %1244 = vmatmul.mubr.msk.f32.vlgmr.msra.gmra.mxu0 %vm410_vm2, %v705_v17  ;;  %1255 = vmatmul.mubr.msk.f32.vlgmr.msra.gmra.mxu1 %vm410_vm2, %v706_v18 }
 0x25e   :  { %v820_v21 = vpop.f32.mrf.mxu0  ;;  %v893_v22 = vpop.f32.mrf.mxu1 }
 0x25f   :  { %v821_v23 = vadd.f32 %v1081_v19, %v820_v21  ;;  %v894_v24 = vadd.f32 %v1082_v20, %v893_v22 }
 0x260   :  { %v1223_v25 = vpop.f32.mrf.mxu0  ;;  %v1234_v26 = vpop.f32.mrf.mxu1 }
 0x261   :  { %1044 = vst.msk [vmem:[#allocation5] sm:$0xff] %vm1043_vm3, %v821_v23  ;;  %1045 = vst.msk [vmem:[#allocation5 + $0x8] sm:$0xff] %vm1043_vm3, %v894_v24 }
 0x267   :  { %v966_v28 = vpop.f32.mrf.mxu0  ;;  %v1039_v29 = vpop.f32.mrf.mxu1 }
 0x268   :  { %v967_v30 = vadd.f32 %v1083_v0, %v966_v28  ;;  %v1040_v31 = vadd.f32 %v1084_v27, %v1039_v29 }
 0x269   :  { %v1245_v32 = vpop.f32.mrf.mxu0  ;;  %v1256_v33 = vpop.f32.mrf.mxu1 }
 0x26a   :  { %1046 = vst.msk [vmem:[#allocation5 + $0x10] sm:$0xff] %vm1043_vm3, %v967_v30  ;;  %1047 = vst.msk [vmem:[#allocation5 + $0x18] sm:$0xff] %vm1043_vm3, %v1040_v31 }
 0x26b   :  { %1294 = shalt.err (!%p1291_p9)
}
 0x26c   :  { %1059 = dma.vmem_to_hbm [thread:$0]  %s1054_s21, 512, %s1587_s7, [#allocation4], %s1308_s27, %s1308_s27, %s1309_s28  }
 0x26d   :  { %1305 = dma.done.wait [#allocation4], 512  }
 0x26e   :  { %1306 = vsyncadd [#allocation4], 4294966784 }
 0x26f   :  { %1063 = vsyncpa [#allocation3], 1 }
 0x270   :  { %1064 = vsyncpa [#allocation4], 1 }

</bundles_post_ra>
